<compile_context>
chip_gen: v7x
topology: tpu7x:2x2x1
jax: 0.10.0
libtpu: 0.0.40
codegen_flags: <defaults>
</compile_context>

<pallas_src>
import functools
import math

import jax
import jax.numpy as jnp
from jax.experimental import pallas as pl
from jax.experimental.pallas import tpu as pltpu


# ----------------------------------------------------------------------------
# helpers
# ----------------------------------------------------------------------------
def _round_up(x, m):
    return (x + m - 1) // m * m


_VMEM_LIMIT = 32 * 1024 * 1024   # safe on v5e/v6e/v7x (<= physical everywhere)
_SINGLE_K_MAX = 5120             # padded-K panels up to this use one k step
_TK_CAP = 4096                   # max k tile when streaming K


def _pick_tk(kp):
    """Largest multiple of 128 that divides kp and is <= _TK_CAP."""
    m = kp // 128
    best = 1
    for d in range(1, m + 1):
        if m % d == 0 and 128 * d <= _TK_CAP:
            best = d
    return 128 * best


# ----------------------------------------------------------------------------
# Fused matmul + per-column scale/shift (+ residual) + optional ReLU
# ----------------------------------------------------------------------------
def _mm_single_k_kernel(*refs, apply_relu, has_residual):
    if has_residual:
        a_ref, b_ref, s_ref, c_ref, r_ref, o_ref = refs
    else:
        a_ref, b_ref, s_ref, c_ref, o_ref = refs
        r_ref = None
    out = jnp.dot(a_ref[...], b_ref[...], preferred_element_type=jnp.float32)
    out = out * s_ref[...] + c_ref[...]
    if r_ref is not None:
        out = out + r_ref[...]
    if apply_relu:
        out = jnp.maximum(out, 0.0)
    o_ref[...] = out.astype(o_ref.dtype)


def _mm_multi_k_kernel(*refs, apply_relu, has_residual):
    if has_residual:
        a_ref, b_ref, s_ref, c_ref, r_ref, o_ref, acc_ref = refs
    else:
        a_ref, b_ref, s_ref, c_ref, o_ref, acc_ref = refs
        r_ref = None
    k = pl.program_id(2)

    @pl.when(k == 0)
    def _():
        acc_ref[...] = jnp.zeros_like(acc_ref)

    acc_ref[...] += jnp.dot(a_ref[...], b_ref[...],
                            preferred_element_type=jnp.float32)

    @pl.when(k == pl.num_programs(2) - 1)
    def _():
        out = acc_ref[...] * s_ref[...] + c_ref[...]
        if r_ref is not None:
            out = out + r_ref[...]
        if apply_relu:
            out = jnp.maximum(out, 0.0)
        o_ref[...] = out.astype(o_ref.dtype)


def matmul_scale_bias_act(a, b, scale, bias, apply_relu, residual=None):
    """out = act((a @ b) * scale + bias [+ residual]); bf16 MXU, f32 accum."""
    M, K = a.shape
    _, N = b.shape
    has_residual = residual is not None

    tm = min(256, _round_up(M, 16))   # bf16 sublane packing -> multiples of 16
    Mp = _round_up(M, tm)
    tn = min(256, _round_up(N, 128))
    Np = _round_up(N, tn)
    Kp = _round_up(K, 128)            # minimal K padding only

    a_p = jnp.pad(a.astype(jnp.bfloat16), ((0, Mp - M), (0, Kp - K)))
    b_p = jnp.pad(b.astype(jnp.bfloat16), ((0, Kp - K), (0, Np - N)))
    s_p = jnp.pad(scale.astype(jnp.float32).reshape(1, N),
                  ((0, 0), (0, Np - N)))
    c_p = jnp.pad(bias.astype(jnp.float32).reshape(1, N),
                  ((0, 0), (0, Np - N)))
    operands = [a_p, b_p, s_p, c_p]
    if has_residual:
        operands.append(
            jnp.pad(residual.astype(jnp.float32), ((0, Mp - M), (0, Np - N))))

    if Kp <= _SINGLE_K_MAX:
        # Full-K panel fits VMEM: single k step, no accumulator scratch.
        grid = (Mp // tm, Np // tn)
        in_specs = [
            pl.BlockSpec((tm, Kp), lambda i, j: (i, 0)),
            pl.BlockSpec((Kp, tn), lambda i, j: (0, j)),
            pl.BlockSpec((1, tn), lambda i, j: (0, j)),
            pl.BlockSpec((1, tn), lambda i, j: (0, j)),
        ]
        if has_residual:
            in_specs.append(pl.BlockSpec((tm, tn), lambda i, j: (i, j)))
        out_specs = pl.BlockSpec((tm, tn), lambda i, j: (i, j))
        scratch = []
        dims = ("parallel", "parallel")
        kernel = functools.partial(_mm_single_k_kernel,
                                   apply_relu=apply_relu,
                                   has_residual=has_residual)
    else:
        tk = _pick_tk(Kp)             # always divides Kp -> zero K waste
        grid = (Mp // tm, Np // tn, Kp // tk)
        in_specs = [
            pl.BlockSpec((tm, tk), lambda i, j, k: (i, k)),
            pl.BlockSpec((tk, tn), lambda i, j, k: (k, j)),
            pl.BlockSpec((1, tn), lambda i, j, k: (0, j)),
            pl.BlockSpec((1, tn), lambda i, j, k: (0, j)),
        ]
        if has_residual:
            in_specs.append(pl.BlockSpec((tm, tn), lambda i, j, k: (i, j)))
        out_specs = pl.BlockSpec((tm, tn), lambda i, j, k: (i, j))
        scratch = [pltpu.VMEM((tm, tn), jnp.float32)]
        dims = ("parallel", "parallel", "arbitrary")
        kernel = functools.partial(_mm_multi_k_kernel,
                                   apply_relu=apply_relu,
                                   has_residual=has_residual)

    bytes_accessed = (Mp * Kp * 2 + Kp * Np * 2 + Mp * Np * 4
                      + (Mp * Np * 4 if has_residual else 0))
    out = pl.pallas_call(
        kernel,
        out_shape=jax.ShapeDtypeStruct((Mp, Np), jnp.float32),
        grid_spec=pltpu.PrefetchScalarGridSpec(
            num_scalar_prefetch=0,
            grid=grid,
            in_specs=in_specs,
            out_specs=out_specs,
            scratch_shapes=scratch,
        ),
        compiler_params=pltpu.CompilerParams(
            dimension_semantics=dims,
            vmem_limit_bytes=_VMEM_LIMIT),
        cost_estimate=pl.CostEstimate(flops=2 * Mp * Kp * Np,
                                      transcendentals=0,
                                      bytes_accessed=bytes_accessed),
    )(*operands)
    if Mp != M or Np != N:
        out = out[:M, :N]
    return out


# ----------------------------------------------------------------------------
# MaxPool 3x3 stride 2 pad 1 (lane-dense 9-way max-reduce kernel)
# ----------------------------------------------------------------------------
_LANES = 512  # lane-dense slab (multiple of 128)


def _max_reduce_kernel(x_ref, o_ref):
    o_ref[...] = jnp.max(x_ref[...], axis=0)


def maxpool_3x3_s2(x):
    N, H, W, C = x.shape
    pad = 1
    Ho = (H + 2 * pad - 3) // 2 + 1
    Wo = (W + 2 * pad - 3) // 2 + 1
    xp = jnp.pad(x, ((0, 0), (pad, pad), (pad, pad), (0, 0)),
                 constant_values=-jnp.inf)
    slices = []
    for i in range(3):
        for j in range(3):
            slices.append(xp[:, i:i + 2 * Ho:2, j:j + 2 * Wo:2, :])
    stacked = jnp.stack(slices, 0).reshape(9, -1)   # (9, total) — small here

    total = stacked.shape[1]
    rows = -(-total // _LANES)
    br = min(256, _round_up(rows, 8))
    rows_pad = _round_up(rows, br)                  # grid divides exactly
    pad_amt = rows_pad * _LANES - total
    x3 = jnp.pad(stacked, ((0, 0), (0, pad_amt)),
                 constant_values=-jnp.inf).reshape(9, rows_pad, _LANES)

    out = pl.pallas_call(
        _max_reduce_kernel,
        out_shape=jax.ShapeDtypeStruct((rows_pad, _LANES), x.dtype),
        grid_spec=pltpu.PrefetchScalarGridSpec(
            num_scalar_prefetch=0,
            grid=(rows_pad // br,),
            in_specs=[pl.BlockSpec((9, br, _LANES), lambda i: (0, i, 0))],
            out_specs=pl.BlockSpec((br, _LANES), lambda i: (i, 0)),
        ),
        compiler_params=pltpu.CompilerParams(
            dimension_semantics=("parallel",),
            vmem_limit_bytes=_VMEM_LIMIT),
    )(x3)
    return out.reshape(-1)[:total].reshape(N, Ho, Wo, C)


# ----------------------------------------------------------------------------
# Convolution via im2col (bf16) + fused Pallas matmul
# ----------------------------------------------------------------------------
def _im2col(x, kh, kw, stride, padding):
    N, H, W, C = x.shape
    Ho = (H + 2 * padding - kh) // stride + 1
    Wo = (W + 2 * padding - kw) // stride + 1
    if padding > 0:
        x = jnp.pad(x, ((0, 0), (padding, padding), (padding, padding), (0, 0)))
    cols = []
    for i in range(kh):
        for j in range(kw):
            cols.append(x[:, i:i + stride * Ho:stride,
                          j:j + stride * Wo:stride, :])
    patches = cols[0] if len(cols) == 1 else jnp.concatenate(cols, axis=-1)
    return patches.reshape(N * Ho * Wo, kh * kw * C), (N, Ho, Wo)


def conv_bn_act(x, w, scale, shift, stride, padding, relu, residual=None):
    """x: NHWC f32, w: (kh,kw,cin,cout). conv -> affine -> (+residual) -> ReLU."""
    kh, kw, cin, cout = w.shape
    # Cast to bf16 BEFORE im2col so the inflated patch tensor is half-size.
    cols, (N, Ho, Wo) = _im2col(x.astype(jnp.bfloat16), kh, kw, stride, padding)
    res2d = None
    if residual is not None:
        res2d = residual.reshape(N * Ho * Wo, cout)
    out = matmul_scale_bias_act(cols, w.reshape(kh * kw * cin, cout),
                                scale, shift, relu, residual=res2d)
    return out.reshape(N, Ho, Wo, cout)


def upsample_nearest_2x(x):
    # Pure data movement (F.interpolate mode='nearest', scale_factor=2).
    N, H, W, C = x.shape
    x = jnp.broadcast_to(x[:, :, None, :, None, :], (N, H, 2, W, 2, C))
    return x.reshape(N, 2 * H, 2 * W, C)


# ----------------------------------------------------------------------------
# Model: parameters + forward
# ----------------------------------------------------------------------------
_BN_EPS = 1e-5
# Static per-layer strides (NOT in the jitted pytree — keeps slices static).
_LAYER_STRIDES = {"layer1": (1, 1), "layer2": (2, 1),
                  "layer3": (2, 1), "layer4": (2, 1)}


def init_params(key):
    counter = [0]

    def nk():
        counter[0] += 1
        return jax.random.fold_in(key, counter[0])

    def conv_w(kh, kw, cin, cout):
        n = kh * kw * cout
        return (jax.random.normal(nk(), (kh, kw, cin, cout), jnp.float32)
                * math.sqrt(2.0 / n))

    def bn(c):  # eval-mode BN folded to (scale, shift)
        return (jnp.full((c,), 1.0 / math.sqrt(1.0 + _BN_EPS), jnp.float32),
                jnp.zeros((c,), jnp.float32))

    def block(cin, cout, stride):
        blk = {
            "conv1": conv_w(3, 3, cin, cout), "bn1": bn(cout),
            "conv2": conv_w(3, 3, cout, cout), "bn2": bn(cout),
        }
        if stride != 1 or cin != cout:
            w = conv_w(1, 1, cin, cout)
            s, h = bn(cout)
            blk["down"] = (w, s, h)
        return blk

    p = {
        "conv1_w": conv_w(7, 7, 3, 64), "bn1": bn(64),
        "layer1": [block(64, 64, 1), block(64, 64, 1)],
        "layer2": [block(64, 128, 2), block(128, 128, 1)],
        "layer3": [block(128, 256, 2), block(256, 256, 1)],
        "layer4": [block(256, 512, 2), block(512, 512, 1)],
        "conv2_w": conv_w(1, 1, 512, 1024),
        "conv2_b": jnp.zeros((1024,), jnp.float32),
    }

    def dec(cin, cout, k):
        w = conv_w(k, k, cin, cout)
        s, h = bn(cout)
        return (w, s, h)

    p["decode1"] = dec(1024, 512, 5)
    p["decode2"] = dec(768, 256, 5)
    p["decode3"] = dec(384, 128, 5)
    p["decode4"] = dec(192, 64, 5)
    p["decode5"] = dec(128, 32, 5)
    p["decode6"] = dec(32, 1, 1)
    return p


def _basic_block(x, blk, stride):
    s1, h1 = blk["bn1"]
    s2, h2 = blk["bn2"]
    out = conv_bn_act(x, blk["conv1"], s1, h1, stride, 1, relu=True)
    if "down" in blk:
        dw, ds, dh = blk["down"]
        identity = conv_bn_act(x, dw, ds, dh, stride, 0, relu=False)
    else:
        identity = x
    # Residual add + ReLU fused into the second conv's matmul epilogue.
    return conv_bn_act(out, blk["conv2"], s2, h2, 1, 1, relu=True,
                       residual=identity)


def forward(params, x_nchw):
    x = jnp.transpose(x_nchw, (0, 2, 3, 1))  # NCHW -> NHWC

    # encoder
    s1, h1 = params["bn1"]
    x1 = conv_bn_act(x, params["conv1_w"], s1, h1, stride=2, padding=3,
                     relu=True)
    x2 = maxpool_3x3_s2(x1)

    def run_layer(t, name):
        for blk, s in zip(params[name], _LAYER_STRIDES[name]):
            t = _basic_block(t, blk, s)
        return t

    x3 = run_layer(x2, "layer1")
    x4 = run_layer(x3, "layer2")
    x5 = run_layer(x4, "layer3")
    x6 = run_layer(x5, "layer4")

    # conv2: 1x1 conv with bias, no BN / ReLU
    x7 = conv_bn_act(x6, params["conv2_w"],
                     jnp.ones((1024,), jnp.float32), params["conv2_b"],
                     stride=1, padding=0, relu=False)

    # decoder with skip concats
    w, s, h = params["decode1"]
    y10 = conv_bn_act(x7, w, s, h, 1, 2, True)
    y9 = upsample_nearest_2x(y10)
    w, s, h = params["decode2"]
    y8 = conv_bn_act(jnp.concatenate([y9, x5], axis=-1), w, s, h, 1, 2, True)
    y7 = upsample_nearest_2x(y8)
    w, s, h = params["decode3"]
    y6 = conv_bn_act(jnp.concatenate([y7, x4], axis=-1), w, s, h, 1, 2, True)
    y5 = upsample_nearest_2x(y6)
    w, s, h = params["decode4"]
    y4 = conv_bn_act(jnp.concatenate([y5, x3], axis=-1), w, s, h, 1, 2, True)
    y3 = upsample_nearest_2x(y4)
    w, s, h = params["decode5"]
    y2 = conv_bn_act(jnp.concatenate([y3, x1], axis=-1), w, s, h, 1, 2, True)
    y1 = upsample_nearest_2x(y2)
    # TODO(synk): decode6 (32->1, 1x1) still uses the MXU path with N padded
    # to 128 lanes; a fused VPU reduce in decode5's epilogue would be cheaper.
    w, s, h = params["decode6"]
    y = conv_bn_act(y1, w, s, h, 1, 0, True)

    return jnp.transpose(y, (0, 3, 1, 2))  # NHWC -> NCHW


# ----------------------------------------------------------------------------
if __name__ == "__main__":
    key = jax.random.PRNGKey(0)
    pkey, xkey = jax.random.split(key)
    params = init_params(pkey)
    x = jax.random.normal(xkey, (2, 3, 64, 64), jnp.float32)

    # Self-test 1: single-k fused kernel vs bf16 reference.
    a = jax.random.normal(jax.random.PRNGKey(1), (40, 70), jnp.float32)
    b = jax.random.normal(jax.random.PRNGKey(2), (70, 20), jnp.float32)
    sc = jax.random.normal(jax.random.PRNGKey(3), (20,), jnp.float32)
    bi = jax.random.normal(jax.random.PRNGKey(4), (20,), jnp.float32)
    got = matmul_scale_bias_act(a, b, sc, bi, True)
    ref = jnp.dot(a.astype(jnp.bfloat16), b.astype(jnp.bfloat16),
                  preferred_element_type=jnp.float32)
    ref = jnp.maximum(ref * sc[None, :] + bi[None, :], 0.0)
    assert jnp.allclose(got, ref, atol=1e-2, rtol=1e-2), "single-k mismatch"

    # Self-test 2: multi-k streaming path with fused residual add.
    a2 = jax.random.normal(jax.random.PRNGKey(5), (64, 6400), jnp.float32) * 0.05
    b2 = jax.random.normal(jax.random.PRNGKey(6), (6400, 256), jnp.float32) * 0.05
    r2 = jax.random.normal(jax.random.PRNGKey(7), (64, 256), jnp.float32)
    sc2 = jnp.ones((256,), jnp.float32)
    bi2 = jnp.zeros((256,), jnp.float32)
    got2 = matmul_scale_bias_act(a2, b2, sc2, bi2, True, residual=r2)
    ref2 = jnp.dot(a2.astype(jnp.bfloat16), b2.astype(jnp.bfloat16),
                   preferred_element_type=jnp.float32)
    ref2 = jnp.maximum(ref2 + r2, 0.0)
    assert jnp.allclose(got2, ref2, atol=1e-2, rtol=1e-2), "multi-k mismatch"

    fwd = jax.jit(forward)
    y = fwd(params, x)
    jax.block_until_ready(y)

    assert y.shape == (2, 1, 64, 64), f"unexpected output shape {y.shape}"
    assert bool(jnp.all(jnp.isfinite(y))), "non-finite values in output"
    print("KERNEL_OK")
</pallas_src>

<mosaic_0001>
module attributes {stable_mosaic.version = 11 : i64} {
  func.func @_mm_single_k_kernel(%arg0: i32, %arg1: i32, %arg2: memref<48x128xbf16, #tpu.memory_space<vmem>>, %arg3: memref<128x128xbf16, #tpu.memory_space<vmem>>, %arg4: memref<1x128xf32, #tpu.memory_space<vmem>>, %arg5: memref<1x128xf32, #tpu.memory_space<vmem>>, %arg6: memref<48x128xf32, #tpu.memory_space<vmem>>) attributes {dimension_semantics = [#tpu.dimension_semantics<parallel>, #tpu.dimension_semantics<parallel>], iteration_bounds = array<i64: 1, 1>, scalar_prefetch = 0 : i64, scratch_operands = 0 : i64, tpu.core_type = #tpu.core_type<tc>, window_params = [{transform_indices = @transform_0, window_bounds = array<i64: 48, 128>}, {transform_indices = @transform_1, window_bounds = array<i64: 128, 128>}, {transform_indices = @transform_2, window_bounds = array<i64: 1, 128>}, {transform_indices = @transform_3, window_bounds = array<i64: 1, 128>}, {transform_indices = @transform_4, window_bounds = array<i64: 48, 128>}]} {
    %c0 = arith.constant 0 : index
    %c0_0 = arith.constant 0 : index
    %0 = vector.load %arg2[%c0, %c0_0] : memref<48x128xbf16, #tpu.memory_space<vmem>>, vector<48x128xbf16>
    %c0_1 = arith.constant 0 : index
    %c0_2 = arith.constant 0 : index
    %1 = vector.load %arg3[%c0_1, %c0_2] : memref<128x128xbf16, #tpu.memory_space<vmem>>, vector<128x128xbf16>
    %cst = arith.constant dense<0.000000e+00> : vector<48x128xf32>
    %2 = tpu.matmul %0, %1, %cst {dimension_numbers = #tpu.dot_dimension_numbers<[1], [0], [0], [1], [0, 0, 1, 1], [], []>} : vector<48x128xbf16>, vector<128x128xbf16>, vector<48x128xf32> -> vector<48x128xf32>
    %c0_3 = arith.constant 0 : index
    %c0_4 = arith.constant 0 : index
    %3 = vector.load %arg4[%c0_3, %c0_4] : memref<1x128xf32, #tpu.memory_space<vmem>>, vector<1x128xf32>
    %4 = vector.broadcast %3 : vector<1x128xf32> to vector<48x128xf32>
    %5 = arith.mulf %2, %4 : vector<48x128xf32>
    %c0_5 = arith.constant 0 : index
    %c0_6 = arith.constant 0 : index
    %6 = vector.load %arg5[%c0_5, %c0_6] : memref<1x128xf32, #tpu.memory_space<vmem>>, vector<1x128xf32>
    %7 = vector.broadcast %6 : vector<1x128xf32> to vector<48x128xf32>
    %8 = arith.addf %5, %7 : vector<48x128xf32>
    %cst_7 = arith.constant 0.000000e+00 : f32
    %9 = vector.broadcast %cst_7 : f32 to vector<48x128xf32>
    %10 = arith.maximumf %8, %9 : vector<48x128xf32>
    %c0_8 = arith.constant 0 : index
    %c0_9 = arith.constant 0 : index
    %11 = vector.load %arg6[%c0_8, %c0_9] : memref<48x128xf32, #tpu.memory_space<vmem>>, vector<48x128xf32>
    tpu.vector_store %arg6[%c0_8, %c0_9], %10 {strides = array<i32>} : memref<48x128xf32, #tpu.memory_space<vmem>>, vector<48x128xf32>,
    return
  }
  func.func @transform_0(%arg0: i32, %arg1: i32) -> (i32, i32) {
    %c0_i32 = arith.constant 0 : i32
    %c0_i32_0 = arith.constant 0 : i32
    return %arg0, %c0_i32 : i32, i32
  }
  func.func @transform_1(%arg0: i32, %arg1: i32) -> (i32, i32) {
    %c0_i32 = arith.constant 0 : i32
    %c0_i32_0 = arith.constant 0 : i32
    return %c0_i32, %arg1 : i32, i32
  }
  func.func @transform_2(%arg0: i32, %arg1: i32) -> (i32, i32) {
    %c0_i32 = arith.constant 0 : i32
    %c0_i32_0 = arith.constant 0 : i32
    return %c0_i32, %arg1 : i32, i32
  }
  func.func @transform_3(%arg0: i32, %arg1: i32) -> (i32, i32) {
    %c0_i32 = arith.constant 0 : i32
    %c0_i32_0 = arith.constant 0 : i32
    return %c0_i32, %arg1 : i32, i32
  }
  func.func @transform_4(%arg0: i32, %arg1: i32) -> (i32, i32) {
    %c0_i32 = arith.constant 0 : i32
    return %arg0, %arg1 : i32, i32
  }
}

</mosaic_0001>

<bundles_post_ra>
// kernel: tpu_custom_call.1
= control target key start
LH: loop header
LB: loop body
LE: loop exit
PB: predicated region body
PF: predicated region fallthrough
CT: control target
= control target key end

     0   :  { %9 = vsyncpa [#allocation3], 0  ;;  %s487_s0 = inlined_call_operand.hbm [shape: bf16[48,128], index: 0, kind: input, shape index: {}]   ;;  %s488_s1 = inlined_call_operand.hbm [shape: bf16[128,128], index: 1, kind: input, shape index: {}]   ;;  %s489_s2 = inlined_call_operand.vmem [shape: f32[1,128], index: 2, kind: input, shape index: {}]   ;;  %s490_s3 = inlined_call_operand.vmem [shape: f32[1,128], index: 3, kind: input, shape index: {}]   ;;  %s491_s4 = inlined_call_operand.hbm [shape: f32[48,128], index: 4, kind: output, shape index: {}]  }
   0x1   :  { %10 = vsyncpa [#allocation6], 0 }
   0x2   :  { %11 = vsyncpa [#allocation4], 0  ;;  %s408_s15 = smov [#allocation2]   ;;  %s336_s19 = scalar_lea.hbm %s487_s0, 384 }
   0x3   :  { %s17_s16 = sshll.u32 %s408_s15, 4  ;;  %p337_p0 = scmp.ne.s32.totalorder %s487_s0, %s336_s19  ;;  %s18_s16 = int_to_ptr.vmem [resolvable:$true] %s17_s16 }
   0x4   :  { %p340_p1 = scmp.lt.u32.totalorder %s336_s19, %s487_s0 }
   0x6   :  { %p342_p2 = pnand %p340_p1, %p337_p0 }
   0x8   :  { %345 = shalt.err (!%p342_p2)
}
   0x9   :  { %s346_s24 = scalar_lea.vmem %s18_s16, 384  ;;  %p351_p4 = scmp.lt.s32.totalorder %s18_s16, %s18_s16 }
   0xa   :  { %p347_p3 = scmp.ne.s32.totalorder %s18_s16, %s346_s24  ;;  %p352_p5 = scmp.lt.s32.totalorder %s346_s24, %s346_s24 }
   0xc   :  { %p353_p6 = por %p352_p5, %p351_p4 }
   0xe   :  { %p354_p7 = pnand %p353_p6, %p347_p3 }
  0x10   :  { %357 = shalt.err (!%p354_p7)
}
  0x11   :  { %s409_s25 = smov 64   ;;  %s410_s26 = smov 4  }
  0x12   :  { %23 = dma.hbm_to_vmem [thread:$0]  %s487_s0, 384, %s18_s16, [#allocation3], %s409_s25, %s409_s25, %s410_s26  }
  0x13   :  { %s411_s29 = smov [#allocation5]   ;;  %s358_s7 = scalar_lea.hbm %s488_s1, 1024 }
  0x14   :  { %s29_s30 = sshll.u32 %s411_s29, 4  ;;  %p359_p8 = scmp.ne.s32.totalorder %s488_s1, %s358_s7  ;;  %s30_s30 = int_to_ptr.vmem [resolvable:$true] %s29_s30 }
  0x15   :  { %p362_p9 = scmp.lt.u32.totalorder %s358_s7, %s488_s1 }
  0x17   :  { %p364_p10 = pnand %p362_p9, %p359_p8 }
  0x19   :  { %367 = shalt.err (!%p364_p10)
}
  0x1a   :  { %s368_s12 = scalar_lea.vmem %s30_s30, 1024  ;;  %p373_p12 = scmp.lt.s32.totalorder %s30_s30, %s30_s30 }
  0x1b   :  { %p369_p11 = scmp.ne.s32.totalorder %s30_s30, %s368_s12  ;;  %p374_p13 = scmp.lt.s32.totalorder %s368_s12, %s368_s12 }
  0x1d   :  { %p375_p0 = por %p374_p13, %p373_p12 }
  0x1f   :  { %p376_p1 = pnand %p375_p0, %p369_p11 }
  0x21   :  { %379 = shalt.err (!%p376_p1)
}
  0x22   :  { %35 = dma.hbm_to_vmem [thread:$0]  %s488_s1, 1024, %s30_s30, [#allocation6], %s409_s25, %s409_s25, %s410_s26  }
  0x23   :  { %402 = dma.done.wait [#allocation3], 384  }
  0x24   :  { %403 = vsyncadd [#allocation3], 4294966912 }
  0x25   :  { %404 = dma.done.wait [#allocation6], 1024  }
  0x26   :  { %405 = vsyncadd [#allocation6], 4294966272  ;;  %v412_v0 = vmov 0.0   ;;  %vm413_vm0 = vmmov 0   ;;  %v325_v1 = vld [vmem:[#allocation5] sm:$0xff]   ;;  %v326_v2 = vld [vmem:[#allocation5 + $0x8] sm:$0xff]  }
  0x27   :  { %300 = vmatprep.subr.bf16.mxu1 %v412_v0  ;;  %272 = vmatprep.subr.bf16.mxu0 %v412_v0  ;;  %v327_v3 = vld [vmem:[#allocation5 + $0x10] sm:$0xff]   ;;  %v328_v4 = vld [vmem:[#allocation5 + $0x18] sm:$0xff]   ;;  %v329_v5 = vld [vmem:[#allocation5 + $0x20] sm:$0xff]  }
  0x28   :  { %292 = vmatprep.mubr.msk.bf16.mxu1 %vm413_vm0, %v412_v0  ;;  %288 = vmatprep.mubr.msk.bf16.mxu0 %vm413_vm0, %v412_v0  ;;  %v330_v6 = vld [vmem:[#allocation5 + $0x28] sm:$0xff]   ;;  %v331_v7 = vld [vmem:[#allocation5 + $0x30] sm:$0xff]   ;;  %v332_v8 = vld [vmem:[#allocation5 + $0x38] sm:$0xff]  }
  0x29   :  { %308 = vmatpush3.bf16.msra.mxu1 %v325_v1  ;;  %273 = vmatpush3.bf16.msra.mxu0 %v325_v1  ;;  %v333_v9 = vld [vmem:[#allocation2 + $0x8] sm:$0xff]   ;;  %v334_v10 = vld [vmem:[#allocation2] sm:$0xff]   ;;  %v335_v11 = vld [vmem:[#allocation2 + $0x10] sm:$0xff]  }
  0x2a   :  { %301 = vmatprep.subr.bf16.mxu1 %v412_v0  ;;  %274 = vmatprep.subr.bf16.mxu0 %v412_v0  ;;  %v259_v12 = vld [vmem:[%s489_s2] ss:$0 sm:$0xff]  ;;  %s414_s2 = smov [#allocation7]  }
  0x2b   :  { %v260_v14 = vld [vmem:[%s490_s3] ss:$0 sm:$0xff]  ;;  %s235_s3 = sshll.u32 %s414_s2, 4  ;;  %s236_s3 = int_to_ptr.vmem [resolvable:$true] %s235_s3 }
  0x2c   :  { %s380_s17 = scalar_lea.vmem %s236_s3, 768  ;;  %p385_p3 = scmp.lt.s32.totalorder %s236_s3, %s236_s3 }
  0x2d   :  { %309 = vmatpush3.bf16.msra.mxu1 %v326_v2  ;;  %275 = vmatpush3.bf16.msra.mxu0 %v326_v2  ;;  %p381_p2 = scmp.ne.s32.totalorder %s236_s3, %s380_s17  ;;  %p386_p4 = scmp.lt.s32.totalorder %s380_s17, %s380_s17 }
  0x2e   :  { %302 = vmatprep.subr.bf16.mxu1 %v412_v0  ;;  %276 = vmatprep.subr.bf16.mxu0 %v412_v0 }
  0x2f   :  { %p387_p5 = por %p386_p4, %p385_p3 }
  0x31   :  { %310 = vmatpush3.bf16.msra.mxu1 %v327_v3  ;;  %277 = vmatpush3.bf16.msra.mxu0 %v327_v3  ;;  %p388_p6 = pnand %p387_p5, %p381_p2 }
  0x32   :  { %303 = vmatprep.subr.bf16.mxu1 %v412_v0  ;;  %278 = vmatprep.subr.bf16.mxu0 %v412_v0 }
  0x35   :  { %311 = vmatpush3.bf16.msra.mxu1 %v328_v4  ;;  %279 = vmatpush3.bf16.msra.mxu0 %v328_v4 }
  0x36   :  { %304 = vmatprep.subr.bf16.mxu1 %v412_v0  ;;  %280 = vmatprep.subr.bf16.mxu0 %v412_v0 }
  0x39   :  { %312 = vmatpush3.bf16.msra.mxu1 %v329_v5  ;;  %281 = vmatpush3.bf16.msra.mxu0 %v329_v5 }
  0x3a   :  { %305 = vmatprep.subr.bf16.mxu1 %v412_v0  ;;  %282 = vmatprep.subr.bf16.mxu0 %v412_v0 }
  0x3d   :  { %313 = vmatpush3.bf16.msra.mxu1 %v330_v6  ;;  %283 = vmatpush3.bf16.msra.mxu0 %v330_v6 }
  0x3e   :  { %306 = vmatprep.subr.bf16.mxu1 %v412_v0  ;;  %284 = vmatprep.subr.bf16.mxu0 %v412_v0 }
  0x41   :  { %314 = vmatpush3.bf16.msra.mxu1 %v331_v7  ;;  %285 = vmatpush3.bf16.msra.mxu0 %v331_v7 }
  0x42   :  { %307 = vmatprep.subr.bf16.mxu1 %v412_v0  ;;  %286 = vmatprep.subr.bf16.mxu0 %v412_v0 }
  0x45   :  { %315 = vmatpush3.bf16.msra.mxu1 %v332_v8  ;;  %287 = vmatpush3.bf16.msra.mxu0 %v332_v8 }
  0x48   :  { %293 = vmatmul.mubr.bf16.vlgmr.msra.gmra.mrb[0].mxu1 %v333_v9  ;;  %289 = vmatmul.mubr.bf16.vlgmr.msra.gmra.mrb[0].mxu0 %v334_v10 }
  0x49   :  { %296 = vmatprep.mubr.msk.bf16.mxu1 %vm413_vm0, %v412_v0 }
  0x50   :  { %297 = vmatmul.mubr.bf16.gmra.mrb[4].mxu1 %v335_v11 }
 0x11b   :  { %v177_v13 = vpop.f32.mrb[0].mxu1  ;;  %v169_v15 = vpop.f32.mrb[0].mxu0 }
 0x11c   :  { %v201_v16 = vmul.f32 %v259_v12, %v177_v13  ;;  %v294_v17 = vpop.f32.mrb[1].mxu1  ;;  %v199_v18 = vmul.f32 %v259_v12, %v169_v15  ;;  %v290_v19 = vpop.f32.mrb[1].mxu0 }
 0x11d   :  { %v180_v20 = vpop.f32.mrb[2].mxu1  ;;  %v172_v21 = vpop.f32.mrb[2].mxu0 }
 0x11e   :  { %v214_v22 = vadd.f32 %v260_v14, %v201_v16  ;;  %v202_v23 = vmul.f32 %v259_v12, %v180_v20  ;;  %v295_v24 = vpop.f32.mrb[3].mxu1  ;;  %v212_v25 = vadd.f32 %v260_v14, %v199_v18  ;;  %v200_v26 = vmul.f32 %v259_v12, %v172_v21  ;;  %v291_v27 = vpop.f32.mrb[3].mxu0 }
 0x120   :  { %v220_v28 = vmax.f32 %v214_v22, 0.0  ;;  %v215_v29 = vadd.f32 %v260_v14, %v202_v23  ;;  %v218_v30 = vmax.f32 %v212_v25, 0.0  ;;  %v213_v31 = vadd.f32 %v260_v14, %v200_v26 }
 0x122   :  { %226 = vst [vmem:[#allocation7 + $0x10] sm:$0xff] %v220_v28  ;;  %v221_v32 = vmax.f32 %v215_v29, 0.0  ;;  %224 = vst [vmem:[#allocation7] sm:$0xff] %v218_v30  ;;  %v219_v33 = vmax.f32 %v213_v31, 0.0 }
 0x123   :  { %v185_v34 = vpop.f32.mrb[4].mxu1 }
 0x124   :  { %227 = vst [vmem:[#allocation7 + $0x18] sm:$0xff] %v221_v32  ;;  %225 = vst [vmem:[#allocation7 + $0x8] sm:$0xff] %v219_v33  ;;  %v203_v35 = vmul.f32 %v259_v12, %v185_v34  ;;  %v298_v36 = vpop.f32.mrb[5].mxu1 }
 0x125   :  { %v188_v37 = vpop.f32.mrb[6].mxu1 }
 0x126   :  { %v216_v38 = vadd.f32 %v260_v14, %v203_v35  ;;  %v204_v39 = vmul.f32 %v259_v12, %v188_v37  ;;  %v299_v40 = vpop.f32.mrb[7].mxu1 }
 0x128   :  { %v222_v41 = vmax.f32 %v216_v38, 0.0  ;;  %v217_v42 = vadd.f32 %v260_v14, %v204_v39 }
 0x12a   :  { %228 = vst [vmem:[#allocation7 + $0x20] sm:$0xff] %v222_v41  ;;  %v223_v43 = vmax.f32 %v217_v42, 0.0 }
 0x12c   :  { %229 = vst [vmem:[#allocation7 + $0x28] sm:$0xff] %v223_v43 }
 0x12d   :  { %391 = shalt.err (!%p388_p6)
}
 0x12e   :  { %s392_s20 = scalar_lea.hbm %s491_s4, 768 }
 0x12f   :  { %p393_p7 = scmp.ne.s32.totalorder %s491_s4, %s392_s20  ;;  %p396_p8 = scmp.lt.u32.totalorder %s392_s20, %s491_s4 }
 0x131   :  { %p398_p9 = pnand %p396_p8, %p393_p7 }
 0x133   :  { %401 = shalt.err (!%p398_p9)
}
 0x134   :  { %s415_s25 = smov 128   ;;  %s416_s26 = smov 8  }
 0x135   :  { %241 = dma.vmem_to_hbm [thread:$0]  %s236_s3, 768, %s491_s4, [#allocation4], %s415_s25, %s415_s25, %s416_s26  }
 0x136   :  { %406 = dma.done.wait [#allocation4], 768  }
 0x137   :  { %407 = vsyncadd [#allocation4], 4294966528 }
 0x138   :  { %245 = vsyncpa [#allocation3], 1 }
 0x139   :  { %246 = vsyncpa [#allocation6], 1 }
 0x13a   :  { %247 = vsyncpa [#allocation4], 1 }

</bundles_post_ra>
